<compile_context>
chip_gen: v6e
topology: v6e:2x2x1
jax: 0.10.0
libtpu: 0.0.40
codegen_flags: <defaults>
</compile_context>

<pallas_src>
import functools

import jax
import jax.numpy as jnp
from jax import lax
from jax.experimental import pallas as pl
from jax.experimental.pallas import tpu as pltpu

_LANE = 128


def _num_tensorcores():
    """2 on dual-TensorCore chips (v4/v5p/v7x), else 1 (v5e/v6e)."""
    try:
        dev = jax.devices()[0]
        if dev.platform != "tpu":
            return 1
        kind = dev.device_kind.lower()
        return 2 if any(t in kind for t in ("v4", "v5p", "v7")) else 1
    except Exception:
        return 1


def _focal_terms(x, t, gamma, gamma_int):
    """Elementwise focal-loss terms in f32 (shared by kernel and JAX tail)."""
    # Numerically-stable BCE-with-logits (matches PyTorch):
    #   bce = max(x, 0) - x*t + log1p(exp(-|x|))
    bce = jnp.maximum(x, 0.0) - x * t + jnp.log1p(jnp.exp(-jnp.abs(x)))
    p_t = jnp.exp(-bce)
    one_m = 1.0 - p_t
    if gamma_int is not None:
        # Integer gamma: pure VPU multiplies, no extra EUP transcendentals.
        if gamma_int == 0:
            focal = jnp.ones_like(one_m)
        else:
            focal = one_m
            for _ in range(gamma_int - 1):
                focal = focal * one_m
    else:
        focal = one_m ** gamma
    return focal * bce  # alpha is folded into the final host-side scale


def _focal_kernel(x_ref, t_ref, out_ref, acc_ref, *, gamma, gamma_int):
    s = pl.program_id(1)

    @pl.when(s == 0)
    def _():
        acc_ref[...] = jnp.zeros_like(acc_ref)

    x = x_ref[...].astype(jnp.float32)
    t = t_ref[...].astype(jnp.float32)
    loss = _focal_terms(x, t, gamma, gamma_int)

    # Fold the (block_rows, 128) tile into a single (8, 128) vreg accumulator:
    # layout-preserving reshape + leading-dim reduce is a plain vreg-add chain,
    # so there is no per-step accumulator VMEM read/write traffic.
    acc_ref[...] += jnp.sum(loss.reshape(-1, 8, _LANE), axis=0)

    @pl.when(s == pl.num_programs(1) - 1)
    def _():
        # One cross-sublane reduce per chunk -> lane-dense (1, 128) partial.
        out_ref[...] = jnp.sum(acc_ref[...], axis=0, keepdims=True)


def focal_loss(logits, targets, alpha: float = 1.0, gamma: float = 2.0,
               reduction: str = "mean", block_rows: int = 2048,
               parallel_chunks=None):
    """Pallas focal loss. Supports reduction in {'mean', 'sum'}."""
    assert logits.shape == targets.shape
    if reduction not in ("mean", "sum"):
        # TODO(synk): reduction='none' would need a per-element output BlockSpec.
        raise NotImplementedError("only 'mean' and 'sum' reductions implemented")

    n_elem = int(logits.size)
    if n_elem == 0:
        return jnp.float32(jnp.nan) if reduction == "mean" else jnp.float32(0.0)

    g = float(gamma)
    gamma_int = int(g) if (g.is_integer() and 0 <= g <= 8) else None

    lane = _LANE
    # Dtype-aware minimum sublane multiple: 8 (f32) / 16 (bf16) / 32 (int8/fp8).
    min_itemsize = min(jnp.dtype(logits.dtype).itemsize,
                       jnp.dtype(targets.dtype).itemsize)
    sub = max(8, 32 // max(1, min_itemsize))

    flat_x = logits.reshape(-1)
    flat_t = targets.reshape(-1)

    # Tiling geometry (static Python ints). The kernel covers the largest
    # aligned prefix; the ragged remainder is reduced in plain JAX -- no
    # jnp.pad copy and no in-kernel mask.
    n_rows_full = n_elem // lane
    block_rows = max(sub, (min(block_rows, n_rows_full) // sub) * sub)
    total_blocks = n_rows_full // block_rows
    if parallel_chunks is None:
        parallel_chunks = _num_tensorcores()
    n_chunks = max(1, min(int(parallel_chunks), total_blocks))
    steps = total_blocks // n_chunks
    rows_main = n_chunks * steps * block_rows
    n_main = rows_main * lane

    total = jnp.float32(0.0)

    if rows_main > 0:
        if n_main == n_elem:
            x_main, t_main = flat_x, flat_t  # contiguous reshape: no copy
        else:
            x_main = lax.slice(flat_x, (0,), (n_main,))
            t_main = lax.slice(flat_t, (0,), (n_main,))
        x2 = x_main.reshape(rows_main, lane)
        t2 = t_main.reshape(rows_main, lane)

        kernel = functools.partial(_focal_kernel, gamma=g, gamma_int=gamma_int)
        chunk_sums = pl.pallas_call(
            kernel,
            out_shape=jax.ShapeDtypeStruct((n_chunks, lane), jnp.float32),
            grid_spec=pltpu.PrefetchScalarGridSpec(
                num_scalar_prefetch=0,
                grid=(n_chunks, steps),
                in_specs=[
                    pl.BlockSpec((block_rows, lane),
                                 lambda c, s: (c * steps + s, 0)),
                    pl.BlockSpec((block_rows, lane),
                                 lambda c, s: (c * steps + s, 0)),
                ],
                out_specs=pl.BlockSpec((1, lane), lambda c, s: (c, 0)),
                scratch_shapes=[pltpu.VMEM((8, lane), jnp.float32)],
            ),
            compiler_params=pltpu.CompilerParams(
                dimension_semantics=("parallel", "arbitrary")),
        )(x2, t2)
        total = total + jnp.sum(chunk_sums)

    if n_main < n_elem:
        # Ragged tail in plain JAX (bounded by ~block_rows*128 elements).
        tx = flat_x[n_main:].astype(jnp.float32)
        tt = flat_t[n_main:].astype(jnp.float32)
        total = total + jnp.sum(_focal_terms(tx, tt, g, gamma_int))

    scale = float(alpha) / n_elem if reduction == "mean" else float(alpha)
    return total * scale


def _focal_loss_ref(logits, targets, alpha=1.0, gamma=2.0, reduction="mean"):
    x = logits.astype(jnp.float32)
    t = targets.astype(jnp.float32)
    bce = jnp.maximum(x, 0.0) - x * t + jnp.log1p(jnp.exp(-jnp.abs(x)))
    p_t = jnp.exp(-bce)
    loss = alpha * (1.0 - p_t) ** gamma * bce
    return jnp.mean(loss) if reduction == "mean" else jnp.sum(loss)


if __name__ == "__main__":
    key = jax.random.PRNGKey(0)
    k1, k2 = jax.random.split(key)
    # Small NCHW logits/targets (loss is shape-agnostic elementwise + reduce).
    logits = jax.random.normal(k1, (2, 4, 16, 16), dtype=jnp.float32) * 2.0
    targets = jax.random.uniform(k2, (2, 4, 16, 16), dtype=jnp.float32)

    out = jax.block_until_ready(
        focal_loss(logits, targets, alpha=1.0, gamma=2.0, reduction="mean"))
    ref = _focal_loss_ref(logits, targets)
    assert jnp.allclose(out, ref, rtol=1e-5, atol=1e-6), (out, ref)

    out_s = jax.block_until_ready(
        focal_loss(logits, targets, alpha=1.0, gamma=2.0, reduction="sum"))
    ref_s = _focal_loss_ref(logits, targets, reduction="sum")
    assert jnp.allclose(out_s, ref_s, rtol=1e-5, atol=1e-4), (out_s, ref_s)

    # Ragged shape: exercises the aligned-prefix kernel + plain-JAX tail path.
    k3, k4 = jax.random.split(k2)
    logits_r = jax.random.normal(k3, (2, 4, 17, 17), dtype=jnp.float32) * 2.0
    targets_r = jax.random.uniform(k4, (2, 4, 17, 17), dtype=jnp.float32)
    out_r = jax.block_until_ready(focal_loss(logits_r, targets_r))
    ref_r = _focal_loss_ref(logits_r, targets_r)
    assert jnp.allclose(out_r, ref_r, rtol=1e-5, atol=1e-6), (out_r, ref_r)

    print("KERNEL_OK")
</pallas_src>

<mosaic_0001>
module attributes {stable_mosaic.version = 11 : i64} {
  func.func @_focal_kernel(%arg0: i32, %arg1: i32, %arg2: memref<16x128xf32, #tpu.memory_space<vmem>>, %arg3: memref<16x128xf32, #tpu.memory_space<vmem>>, %arg4: memref<1x128xf32, #tpu.memory_space<vmem>>, %arg5: memref<8x128xf32, #tpu.memory_space<vmem>>) attributes {dimension_semantics = [#tpu.dimension_semantics<parallel>, #tpu.dimension_semantics<arbitrary>], iteration_bounds = array<i64: 1, 1>, scalar_prefetch = 0 : i64, scratch_operands = 1 : i64, tpu.core_type = #tpu.core_type<tc>, window_params = [{transform_indices = @transform_0, window_bounds = array<i64: 16, 128>}, {transform_indices = @transform_1, window_bounds = array<i64: 16, 128>}, {transform_indices = @transform_2, window_bounds = array<i64: 1, 128>}]} {
    %c0_i32 = arith.constant 0 : i32
    %0 = arith.cmpi eq, %arg1, %c0_i32 : i32
    %1 = arith.extui %0 : i1 to i32
    %c0_i32_0 = arith.constant 0 : i32
    %2 = arith.cmpi ne, %1, %c0_i32_0 : i32
    scf.if %2 {
      %cst_14 = arith.constant 0.000000e+00 : f32
      %30 = vector.broadcast %cst_14 : f32 to vector<8x128xf32>
      %c0_15 = arith.constant 0 : index
      %c0_16 = arith.constant 0 : index
      %31 = vector.load %arg5[%c0_15, %c0_16] : memref<8x128xf32, #tpu.memory_space<vmem>>, vector<8x128xf32>
      tpu.vector_store %arg5[%c0_15, %c0_16], %30 {strides = array<i32>} : memref<8x128xf32, #tpu.memory_space<vmem>>, vector<8x128xf32>,
    } else {
    }
    %c0 = arith.constant 0 : index
    %c0_1 = arith.constant 0 : index
    %3 = vector.load %arg2[%c0, %c0_1] : memref<16x128xf32, #tpu.memory_space<vmem>>, vector<16x128xf32>
    %c0_2 = arith.constant 0 : index
    %c0_3 = arith.constant 0 : index
    %4 = vector.load %arg3[%c0_2, %c0_3] : memref<16x128xf32, #tpu.memory_space<vmem>>, vector<16x128xf32>
    %cst = arith.constant 0.000000e+00 : f32
    %5 = vector.broadcast %cst : f32 to vector<16x128xf32>
    %6 = arith.maximumf %3, %5 : vector<16x128xf32>
    %7 = arith.mulf %3, %4 : vector<16x128xf32>
    %8 = arith.subf %6, %7 : vector<16x128xf32>
    %9 = math.absf %3 : vector<16x128xf32>
    %cst_4 = arith.constant 0.000000e+00 : f32
    %10 = vector.broadcast %cst_4 : f32 to vector<16x128xf32>
    %11 = arith.subf %10, %9 : vector<16x128xf32>
    %12 = math.exp %11 : vector<16x128xf32>
    %13 = math.log1p %12 : vector<16x128xf32>
    %14 = arith.addf %8, %13 : vector<16x128xf32>
    %cst_5 = arith.constant 0.000000e+00 : f32
    %15 = vector.broadcast %cst_5 : f32 to vector<16x128xf32>
    %16 = arith.subf %15, %14 : vector<16x128xf32>
    %17 = math.exp %16 : vector<16x128xf32>
    %cst_6 = arith.constant 1.000000e+00 : f32
    %18 = vector.broadcast %cst_6 : f32 to vector<16x128xf32>
    %19 = arith.subf %18, %17 : vector<16x128xf32>
    %20 = arith.mulf %19, %19 : vector<16x128xf32>
    %21 = arith.mulf %20, %14 : vector<16x128xf32>
    %c0_7 = arith.constant 0 : index
    %c0_8 = arith.constant 0 : index
    %22 = vector.load %arg5[%c0_7, %c0_8] : memref<8x128xf32, #tpu.memory_space<vmem>>, vector<8x128xf32>
    %23 = vector.shape_cast %21 : vector<16x128xf32> to vector<2x8x128xf32>
    %cst_9 = arith.constant dense<0.000000e+00> : vector<8x128xf32>
    %24 = vector.multi_reduction <add>, %23, %cst_9 [0] : vector<2x8x128xf32> to vector<8x128xf32>
    %25 = arith.addf %22, %24 : vector<8x128xf32>
    %c0_10 = arith.constant 0 : index
    %c0_11 = arith.constant 0 : index
    %26 = vector.load %arg5[%c0_10, %c0_11] : memref<8x128xf32, #tpu.memory_space<vmem>>, vector<8x128xf32>
    tpu.vector_store %arg5[%c0_10, %c0_11], %25 {strides = array<i32>} : memref<8x128xf32, #tpu.memory_space<vmem>>, vector<8x128xf32>,
    %c0_i32_12 = arith.constant 0 : i32
    %27 = arith.cmpi eq, %arg1, %c0_i32_12 : i32
    %28 = arith.extui %27 : i1 to i32
    %c0_i32_13 = arith.constant 0 : i32
    %29 = arith.cmpi ne, %28, %c0_i32_13 : i32
    scf.if %29 {
      %c0_14 = arith.constant 0 : index
      %c0_15 = arith.constant 0 : index
      %30 = vector.load %arg5[%c0_14, %c0_15] : memref<8x128xf32, #tpu.memory_space<vmem>>, vector<8x128xf32>
      %cst_16 = arith.constant dense<0.000000e+00> : vector<128xf32>
      %31 = vector.multi_reduction <add>, %30, %cst_16 [0] : vector<8x128xf32> to vector<128xf32>
      %32 = vector.shape_cast %31 : vector<128xf32> to vector<1x128xf32>
      %c0_17 = arith.constant 0 : index
      %c0_18 = arith.constant 0 : index
      %33 = vector.load %arg4[%c0_17, %c0_18] : memref<1x128xf32, #tpu.memory_space<vmem>>, vector<1x128xf32>
      tpu.vector_store %arg4[%c0_17, %c0_18], %32 {strides = array<i32>} : memref<1x128xf32, #tpu.memory_space<vmem>>, vector<1x128xf32>,
    } else {
    }
    return
  }
  func.func @transform_0(%arg0: i32, %arg1: i32) -> (i32, i32) {
    %c1_i32 = arith.constant 1 : i32
    %0 = arith.muli %arg0, %c1_i32 : i32
    %1 = arith.addi %0, %arg1 : i32
    %c0_i32 = arith.constant 0 : i32
    %c0_i32_0 = arith.constant 0 : i32
    return %1, %c0_i32 : i32, i32
  }
  func.func @transform_1(%arg0: i32, %arg1: i32) -> (i32, i32) {
    %c1_i32 = arith.constant 1 : i32
    %0 = arith.muli %arg0, %c1_i32 : i32
    %1 = arith.addi %0, %arg1 : i32
    %c0_i32 = arith.constant 0 : i32
    %c0_i32_0 = arith.constant 0 : i32
    return %1, %c0_i32 : i32, i32
  }
  func.func @transform_2(%arg0: i32, %arg1: i32) -> (i32, i32) {
    %c0_i32 = arith.constant 0 : i32
    %c0_i32_0 = arith.constant 0 : i32
    return %arg0, %c0_i32 : i32, i32
  }
}

</mosaic_0001>

<bundles_post_ra>
// kernel: tpu_custom_call.1
= control target key start
LH: loop header
LB: loop body
LE: loop exit
PB: predicated region body
PF: predicated region fallthrough
CT: control target
= control target key end

     0   :  { %7 = vsyncpa [#allocation4], 0  ;;  %s250_s0 = inlined_call_operand.hbm [shape: f32[16,128], index: 0, kind: input, shape index: {}]   ;;  %s251_s1 = inlined_call_operand.hbm [shape: f32[16,128], index: 1, kind: input, shape index: {}]   ;;  %s252_s2 = inlined_call_operand.hbm [shape: f32[1,128], index: 2, kind: output, shape index: {}]  }
   0x1   :  { %8 = vsyncpa [#allocation7], 0 }
   0x2   :  { %9 = vsyncpa [#allocation5], 0  ;;  %s221_s9 = smov [#allocation3]  }
   0x3   :  { %s19_s10 = sshll.u32 %s221_s9, 4  ;;  %s20_s10 = int_to_ptr.vmem [resolvable:$true] %s19_s10 }
   0x4   :  { %s163_s11 = scalar_lea.vmem %s20_s10, 256  ;;  %p168_p1 = scmp.lt.s32.totalorder %s20_s10, %s20_s10 }
   0x5   :  { %p164_p0 = scmp.ne.s32.totalorder %s20_s10, %s163_s11  ;;  %p169_p2 = scmp.lt.s32.totalorder %s163_s11, %s163_s11 }
   0x7   :  { %p170_p3 = por %p169_p2, %p168_p1 }
   0x9   :  { %p171_p4 = pnand %p170_p3, %p164_p0 }
   0xb   :  { %174 = shalt.err (!%p171_p4)
}
   0xc   :  { %s222_s12 = smov 128   ;;  %s223_s13 = smov 8  }
   0xd   :  { %25 = dma.hbm_to_vmem [thread:$0]  %s250_s0, 256, %s20_s10, [#allocation4], %s222_s12, %s222_s12, %s223_s13  }
   0xe   :  { %s224_s16 = smov [#allocation6]  }
   0xf   :  { %s35_s17 = sshll.u32 %s224_s16, 4  ;;  %s36_s17 = int_to_ptr.vmem [resolvable:$true] %s35_s17 }
  0x10   :  { %s183_s18 = scalar_lea.vmem %s36_s17, 256  ;;  %p188_p6 = scmp.lt.s32.totalorder %s36_s17, %s36_s17 }
  0x11   :  { %p184_p5 = scmp.ne.s32.totalorder %s36_s17, %s183_s18  ;;  %p189_p7 = scmp.lt.s32.totalorder %s183_s18, %s183_s18 }
  0x13   :  { %p190_p8 = por %p189_p7, %p188_p6 }
  0x15   :  { %p191_p9 = pnand %p190_p8, %p184_p5 }
  0x17   :  { %194 = shalt.err (!%p191_p9)
}
  0x18   :  { %41 = dma.hbm_to_vmem [thread:$0]  %s251_s1, 256, %s36_s17, [#allocation7], %s222_s12, %s222_s12, %s223_s13  }
  0x19   :  { %215 = dma.done.wait [#allocation4], 256  }
  0x1a   :  { %216 = vsyncadd [#allocation4], 4294967040 }
  0x1b   :  { %217 = dma.done.wait [#allocation7], 256  }
  0x1c   :  { %218 = vsyncadd [#allocation7], 4294967040  ;;  %v57_v0 = vld [vmem:[#allocation3] sm:$0xff]  ;;  %v58_v1 = vld [vmem:[#allocation3 + $0x8] sm:$0xff]  ;;  %s225_s0 = smov [#allocation8]  }
  0x1d   :  { %v67_v2 = vand.u32 2147483647, %v57_v0  ;;  %v68_v3 = vand.u32 2147483647, %v58_v1  ;;  %v59_v14 = vld [vmem:[#allocation6] sm:$0xff]  ;;  %v60_v15 = vld [vmem:[#allocation6 + $0x8] sm:$0xff] }
  0x1e   :  { %v61_v17 = vmax.f32 %v57_v0, 0.0  ;;  %v63_v18 = vmul.f32 %v59_v14, %v57_v0  ;;  %v62_v21 = vmax.f32 %v58_v1, 0.0  ;;  %v64_v22 = vmul.f32 %v60_v15, %v58_v1  ;;  %s128_s1 = sshll.u32 %s225_s0, 4  ;;  %s129_s1 = int_to_ptr.vmem [resolvable:$true] %s128_s1 }
  0x1f   :  { %v69_v4 = vsub.f32 0.0, %v67_v2  ;;  %v70_v5 = vsub.f32 0.0, %v68_v3  ;;  %s195_s21 = scalar_lea.vmem %s129_s1, 16  ;;  %s199_s22 = scalar_lea.vmem %s129_s1, 32 }
  0x20   :  { %v65_v26 = vsub.f32 %v61_v17, %v63_v18  ;;  %v66_v29 = vsub.f32 %v62_v21, %v64_v22  ;;  %p196_p10 = scmp.ne.s32.totalorder %s129_s1, %s195_s21  ;;  %p200_p11 = scmp.lt.s32.totalorder %s129_s1, %s129_s1 }
  0x21   :  { %v71_v6 = vmul.f32 1.442695, %v69_v4  ;;  %v73_v7 = vmul.f32 1.442695, %v70_v5  ;;  %p201_p12 = scmp.lt.s32.totalorder %s199_s22, %s195_s21 }
  0x23   :  { %143 = vpow2.f32 %v71_v6  ;;  %p202_p13 = por %p201_p12, %p200_p11 }
  0x24   :  { %145 = vpow2.f32 %v73_v7 }
  0x25   :  { %p203_p0 = pnand %p202_p13, %p196_p10 }
  0x30   :  { %v144_v8 = vpop.eup %143 }
  0x31   :  { %v146_v9 = vpop.eup %145  ;;  %v75_v10 = vadd.f32 1.0, %v144_v8  ;;  %v78_v12 = vmul.f32 -0.5, %v144_v8  ;;  %v81_v19 = vand.u32 2147483647, %v144_v8 }
  0x32   :  { %v84_v11 = vadd.f32 1.0, %v146_v9  ;;  %v87_v13 = vmul.f32 -0.5, %v146_v9  ;;  %v90_v23 = vand.u32 2147483647, %v146_v9 }
  0x33   :  { %147 = vlog2.f32 %v75_v10  ;;  %v79_v16 = vadd.f32 1.0, %v78_v12  ;;  %vm82_vm0 = vcmp.lt.f32.partialorder %v81_v19, 0.0004427343 }
  0x34   :  { %149 = vlog2.f32 %v84_v11  ;;  %v88_v20 = vadd.f32 1.0, %v87_v13  ;;  %vm91_vm1 = vcmp.lt.f32.partialorder %v90_v23, 0.0004427343 }
  0x35   :  { %v80_v24 = vmul.f32 %v144_v8, %v79_v16 }
  0x36   :  { %v89_v27 = vmul.f32 %v146_v9, %v88_v20 }
  0x40   :  { %v148_v25 = vpop.eup %147 }
  0x41   :  { %v150_v28 = vpop.eup %149  ;;  %v77_v30 = vmul.f32 0.6931472, %v148_v25 }
  0x42   :  { %v86_v31 = vmul.f32 0.6931472, %v150_v28 }
  0x43   :  { %v83_v32 = vsel %vm82_vm0, %v80_v24, %v77_v30 }
  0x44   :  { %v92_v33 = vsel %vm91_vm1, %v89_v27, %v86_v31  ;;  %v93_v34 = vadd.f32 %v83_v32, %v65_v26 }
  0x45   :  { %v94_v35 = vadd.f32 %v92_v33, %v66_v29 }
  0x46   :  { %v95_v36 = vsub.f32 0.0, %v93_v34 }
  0x47   :  { %v96_v37 = vsub.f32 0.0, %v94_v35 }
  0x48   :  { %v97_v38 = vmul.f32 1.442695, %v95_v36 }
  0x49   :  { %v99_v39 = vmul.f32 1.442695, %v96_v37 }
  0x4a   :  { %151 = vpow2.f32 %v97_v38 }
  0x4b   :  { %153 = vpow2.f32 %v99_v39 }
  0x57   :  { %v152_v40 = vpop.eup %151 }
  0x58   :  { %v154_v41 = vpop.eup %153  ;;  %v101_v42 = vsub.f32 1.0, %v152_v40 }
  0x59   :  { %v102_v43 = vsub.f32 1.0, %v154_v41 }
  0x5a   :  { %v103_v44 = vmul.f32 %v101_v42, %v101_v42 }
  0x5b   :  { %v104_v45 = vmul.f32 %v102_v43, %v102_v43 }
  0x5c   :  { %v105_v46 = vmul.f32 %v103_v44, %v93_v34 }
  0x5d   :  { %v106_v47 = vmul.f32 %v104_v45, %v94_v35 }
  0x5f   :  { %v108_v48 = vadd.f32 %v106_v47, %v105_v46 }
  0x61   :  { %v115_v49 = vrot.slane %v108_v48, 4 }
  0x63   :  { %v116_v50 = vadd.f32 %v115_v49, %v108_v48 }
  0x65   :  { %v117_v51 = vrot.slane %v116_v50, 2 }
  0x67   :  { %v118_v52 = vadd.f32 %v117_v51, %v116_v50 }
  0x69   :  { %v119_v53 = vrot.slane %v118_v52, 1 }
  0x6b   :  { %v120_v54 = vadd.f32 %v119_v53, %v118_v52 }
  0x6d   :  { %121 = vst [vmem:[#allocation8] sm:$0x1] %v120_v54 }
  0x6e   :  { %206 = shalt.err (!%p203_p0)
}
  0x6f   :  { %131 = dma.vmem_to_hbm [thread:$0]  %s129_s1, 16, %s252_s2, [#allocation5]  }
  0x70   :  { %219 = dma.done.wait [#allocation5], 16  }
  0x71   :  { %220 = vsyncadd [#allocation5], 4294967280 }
  0x72   :  { %135 = vsyncpa [#allocation4], 1 }
  0x73   :  { %136 = vsyncpa [#allocation7], 1 }
  0x74   :  { %137 = vsyncpa [#allocation5], 1 }

</bundles_post_ra>
